<compile_context>
chip_gen: v7x
topology: tpu7x:2x2x1
jax: 0.10.0
libtpu: 0.0.40
codegen_flags: <defaults>
</compile_context>

<pallas_src>
import jax
import jax.numpy as jnp
from jax.experimental import pallas as pl
from jax.experimental.pallas import tpu as pltpu

_LANES = 128
_SUBLANES = 8


def _iou_partial_kernel(x_ref, t_ref, inter_ref, total_ref):
    """One grid step: sigmoid + elementwise mul/add, accumulated lane-wide.

    x_ref, t_ref         : (B, tile_rows, 128) input tiles
    inter_ref, total_ref : (1, B, 128) f32 partial sums, resident across k
    """
    k = pl.program_id(1)

    @pl.when(k == 0)
    def _():
        inter_ref[...] = jnp.zeros_like(inter_ref)
        total_ref[...] = jnp.zeros_like(total_ref)

    x = jax.nn.sigmoid(x_ref[...].astype(jnp.float32))
    t = t_ref[...].astype(jnp.float32)

    # Reduce only the rows axis; keep all 128 lanes. The final cross-lane
    # reduce to a per-sample scalar happens once, outside the kernel.
    inter_ref[...] += jnp.sum(x * t, axis=1)[None]
    total_ref[...] += jnp.sum(x + t, axis=1)[None]


def iou_loss(inputs, targets, smooth=1.0, *,
             target_block_bytes=2 << 20, max_parallel=2):
    """Pallas implementation of IoULoss.forward (NCHW inputs)."""
    B = inputs.shape[0]
    N = 1
    for d in inputs.shape[1:]:
        N *= d

    itemsize = max(jnp.dtype(inputs.dtype).itemsize,
                   jnp.dtype(targets.dtype).itemsize)

    rows = pl.cdiv(N, _LANES)
    rows_rounded = pl.cdiv(rows, _SUBLANES) * _SUBLANES

    # Rows per block so each input block is ~target_block_bytes
    # (2 inputs x 2 pipeline buffers stays well under scoped VMEM defaults).
    bytes_per_row = B * _LANES * itemsize
    tile_rows = max(
        _SUBLANES,
        (target_block_bytes // bytes_per_row) // _SUBLANES * _SUBLANES,
    )
    tile_rows = min(tile_rows, rows_rounded)

    num_blocks = pl.cdiv(rows, tile_rows)
    P = max(1, min(max_parallel, num_blocks))     # parallel chunks (v7x: 2 TCs)
    num_blocks = pl.cdiv(num_blocks, P) * P       # make divisible by P
    K = num_blocks // P                           # reduction steps per chunk

    rows_padded = num_blocks * tile_rows
    n_padded = rows_padded * _LANES

    x_flat = inputs.reshape(B, N)
    t_flat = targets.reshape(B, N)
    if n_padded > N:
        # sigmoid(-1e4) == 0 in f32 and the target pad is 0, so padding
        # contributes nothing to either partial sum.
        x_flat = jnp.pad(x_flat, ((0, 0), (0, n_padded - N)),
                         constant_values=-1e4)
        t_flat = jnp.pad(t_flat, ((0, 0), (0, n_padded - N)),
                         constant_values=0)

    x3 = x_flat.reshape(B, rows_padded, _LANES)
    t3 = t_flat.reshape(B, rows_padded, _LANES)

    in_block = pl.BlockSpec((B, tile_rows, _LANES),
                            lambda p, k: (0, p * K + k, 0))
    out_block = pl.BlockSpec((1, B, _LANES), lambda p, k: (p, 0, 0))

    inter_part, total_part = pl.pallas_call(
        _iou_partial_kernel,
        out_shape=(
            jax.ShapeDtypeStruct((P, B, _LANES), jnp.float32),
            jax.ShapeDtypeStruct((P, B, _LANES), jnp.float32),
        ),
        grid_spec=pltpu.PrefetchScalarGridSpec(
            num_scalar_prefetch=0,
            grid=(P, K),
            in_specs=[in_block, in_block],
            out_specs=[out_block, out_block],
        ),
        compiler_params=pltpu.CompilerParams(
            dimension_semantics=("parallel", "arbitrary"),
        ),
    )(x3, t3)

    # Tiny glue: final cross-lane / cross-chunk reduce + IoU formula + mean.
    intersection = jnp.sum(inter_part, axis=(0, 2))   # (B,)
    total = jnp.sum(total_part, axis=(0, 2))          # (B,)
    union = total - intersection
    iou = (intersection + smooth) / (union + smooth)
    return 1.0 - jnp.mean(iou)


def iou_loss_ref(inputs, targets, smooth=1.0):
    """Pure-JAX reference mirroring the PyTorch IoULoss module exactly."""
    x = jax.nn.sigmoid(inputs.astype(jnp.float32))
    t = targets.astype(jnp.float32)
    intersection = jnp.sum(x * t, axis=(1, 2, 3))
    total = jnp.sum(x + t, axis=(1, 2, 3))
    union = total - intersection
    iou = (intersection + smooth) / (union + smooth)
    return 1.0 - jnp.mean(iou)


if __name__ == "__main__":
    key = jax.random.PRNGKey(0)
    k1, k2 = jax.random.split(key)
    B, C, H, W = 2, 4, 16, 16  # NCHW, flattened N = 1024

    inputs = jax.random.normal(k1, (B, C, H, W), dtype=jnp.float32)
    targets = (jax.random.uniform(k2, (B, C, H, W)) > 0.5).astype(jnp.float32)

    loss = iou_loss(inputs, targets, smooth=1.0)
    loss = jax.block_until_ready(loss)

    ref = iou_loss_ref(inputs, targets, smooth=1.0)
    assert jnp.allclose(loss, ref, atol=1e-5, rtol=1e-5), (loss, ref)

    print("KERNEL_OK")
</pallas_src>

<mosaic_0001>
module attributes {stable_mosaic.version = 11 : i64} {
  func.func @_iou_partial_kernel(%arg0: i32, %arg1: i32, %arg2: memref<2x8x128xf32, #tpu.memory_space<vmem>>, %arg3: memref<2x8x128xf32, #tpu.memory_space<vmem>>, %arg4: memref<1x2x128xf32, #tpu.memory_space<vmem>>, %arg5: memref<1x2x128xf32, #tpu.memory_space<vmem>>) attributes {dimension_semantics = [#tpu.dimension_semantics<parallel>, #tpu.dimension_semantics<arbitrary>], iteration_bounds = array<i64: 1, 1>, scalar_prefetch = 0 : i64, scratch_operands = 0 : i64, tpu.core_type = #tpu.core_type<tc>, window_params = [{transform_indices = @transform_0, window_bounds = array<i64: 2, 8, 128>}, {transform_indices = @transform_1, window_bounds = array<i64: 2, 8, 128>}, {transform_indices = @transform_2, window_bounds = array<i64: 1, 2, 128>}, {transform_indices = @transform_3, window_bounds = array<i64: 1, 2, 128>}]} {
    %c0_i32 = arith.constant 0 : i32
    %0 = arith.cmpi eq, %arg1, %c0_i32 : i32
    %1 = arith.extui %0 : i1 to i32
    %c0_i32_0 = arith.constant 0 : i32
    %2 = arith.cmpi ne, %1, %c0_i32_0 : i32
    scf.if %2 {
      %cst_20 = arith.constant 0.000000e+00 : f32
      %22 = vector.broadcast %cst_20 : f32 to vector<1x2x128xf32>
      %c0_21 = arith.constant 0 : index
      %c0_22 = arith.constant 0 : index
      %c0_23 = arith.constant 0 : index
      %23 = vector.load %arg4[%c0_21, %c0_22, %c0_23] : memref<1x2x128xf32, #tpu.memory_space<vmem>>, vector<1x2x128xf32>
      tpu.vector_store %arg4[%c0_21, %c0_22, %c0_23], %22 {strides = array<i32>} : memref<1x2x128xf32, #tpu.memory_space<vmem>>, vector<1x2x128xf32>,
      %cst_24 = arith.constant 0.000000e+00 : f32
      %24 = vector.broadcast %cst_24 : f32 to vector<1x2x128xf32>
      %c0_25 = arith.constant 0 : index
      %c0_26 = arith.constant 0 : index
      %c0_27 = arith.constant 0 : index
      %25 = vector.load %arg5[%c0_25, %c0_26, %c0_27] : memref<1x2x128xf32, #tpu.memory_space<vmem>>, vector<1x2x128xf32>
      tpu.vector_store %arg5[%c0_25, %c0_26, %c0_27], %24 {strides = array<i32>} : memref<1x2x128xf32, #tpu.memory_space<vmem>>, vector<1x2x128xf32>,
    } else {
    }
    %c0 = arith.constant 0 : index
    %c0_1 = arith.constant 0 : index
    %c0_2 = arith.constant 0 : index
    %3 = vector.load %arg2[%c0, %c0_1, %c0_2] : memref<2x8x128xf32, #tpu.memory_space<vmem>>, vector<2x8x128xf32>
    %4 = arith.negf %3 : vector<2x8x128xf32>
    %5 = math.exp %4 : vector<2x8x128xf32>
    %cst = arith.constant 1.000000e+00 : f32
    %6 = vector.broadcast %cst : f32 to vector<2x8x128xf32>
    %7 = arith.addf %6, %5 : vector<2x8x128xf32>
    %8 = arith.divf %6, %7 : vector<2x8x128xf32>
    %c0_3 = arith.constant 0 : index
    %c0_4 = arith.constant 0 : index
    %c0_5 = arith.constant 0 : index
    %9 = vector.load %arg3[%c0_3, %c0_4, %c0_5] : memref<2x8x128xf32, #tpu.memory_space<vmem>>, vector<2x8x128xf32>
    %c0_6 = arith.constant 0 : index
    %c0_7 = arith.constant 0 : index
    %c0_8 = arith.constant 0 : index
    %10 = vector.load %arg4[%c0_6, %c0_7, %c0_8] : memref<1x2x128xf32, #tpu.memory_space<vmem>>, vector<1x2x128xf32>
    %11 = arith.mulf %8, %9 : vector<2x8x128xf32>
    %cst_9 = arith.constant dense<0.000000e+00> : vector<2x128xf32>
    %12 = vector.multi_reduction <add>, %11, %cst_9 [1] : vector<2x8x128xf32> to vector<2x128xf32>
    %13 = vector.shape_cast %12 : vector<2x128xf32> to vector<1x2x128xf32>
    %14 = arith.addf %10, %13 : vector<1x2x128xf32>
    %c0_10 = arith.constant 0 : index
    %c0_11 = arith.constant 0 : index
    %c0_12 = arith.constant 0 : index
    %15 = vector.load %arg4[%c0_10, %c0_11, %c0_12] : memref<1x2x128xf32, #tpu.memory_space<vmem>>, vector<1x2x128xf32>
    tpu.vector_store %arg4[%c0_10, %c0_11, %c0_12], %14 {strides = array<i32>} : memref<1x2x128xf32, #tpu.memory_space<vmem>>, vector<1x2x128xf32>,
    %c0_13 = arith.constant 0 : index
    %c0_14 = arith.constant 0 : index
    %c0_15 = arith.constant 0 : index
    %16 = vector.load %arg5[%c0_13, %c0_14, %c0_15] : memref<1x2x128xf32, #tpu.memory_space<vmem>>, vector<1x2x128xf32>
    %17 = arith.addf %8, %9 : vector<2x8x128xf32>
    %cst_16 = arith.constant dense<0.000000e+00> : vector<2x128xf32>
    %18 = vector.multi_reduction <add>, %17, %cst_16 [1] : vector<2x8x128xf32> to vector<2x128xf32>
    %19 = vector.shape_cast %18 : vector<2x128xf32> to vector<1x2x128xf32>
    %20 = arith.addf %16, %19 : vector<1x2x128xf32>
    %c0_17 = arith.constant 0 : index
    %c0_18 = arith.constant 0 : index
    %c0_19 = arith.constant 0 : index
    %21 = vector.load %arg5[%c0_17, %c0_18, %c0_19] : memref<1x2x128xf32, #tpu.memory_space<vmem>>, vector<1x2x128xf32>
    tpu.vector_store %arg5[%c0_17, %c0_18, %c0_19], %20 {strides = array<i32>} : memref<1x2x128xf32, #tpu.memory_space<vmem>>, vector<1x2x128xf32>,
    return
  }
  func.func @transform_0(%arg0: i32, %arg1: i32) -> (i32, i32, i32) {
    %c1_i32 = arith.constant 1 : i32
    %0 = arith.muli %arg0, %c1_i32 : i32
    %1 = arith.addi %0, %arg1 : i32
    %c0_i32 = arith.constant 0 : i32
    %c0_i32_0 = arith.constant 0 : i32
    %c0_i32_1 = arith.constant 0 : i32
    return %c0_i32, %1, %c0_i32_0 : i32, i32, i32
  }
  func.func @transform_1(%arg0: i32, %arg1: i32) -> (i32, i32, i32) {
    %c1_i32 = arith.constant 1 : i32
    %0 = arith.muli %arg0, %c1_i32 : i32
    %1 = arith.addi %0, %arg1 : i32
    %c0_i32 = arith.constant 0 : i32
    %c0_i32_0 = arith.constant 0 : i32
    %c0_i32_1 = arith.constant 0 : i32
    return %c0_i32, %1, %c0_i32_0 : i32, i32, i32
  }
  func.func @transform_2(%arg0: i32, %arg1: i32) -> (i32, i32, i32) {
    %c0_i32 = arith.constant 0 : i32
    %c0_i32_0 = arith.constant 0 : i32
    %c0_i32_1 = arith.constant 0 : i32
    return %arg0, %c0_i32, %c0_i32_0 : i32, i32, i32
  }
  func.func @transform_3(%arg0: i32, %arg1: i32) -> (i32, i32, i32) {
    %c0_i32 = arith.constant 0 : i32
    %c0_i32_0 = arith.constant 0 : i32
    %c0_i32_1 = arith.constant 0 : i32
    return %arg0, %c0_i32, %c0_i32_0 : i32, i32, i32
  }
}

</mosaic_0001>

<bundles_post_ra>
// kernel: tpu_custom_call.1
= control target key start
LH: loop header
LB: loop body
LE: loop exit
PB: predicated region body
PF: predicated region fallthrough
CT: control target
= control target key end

     0   :  { %9 = vsyncpa [#allocation3], 0  ;;  %s334_s0 = inlined_call_operand.hbm [shape: f32[2,8,128], index: 0, kind: input, shape index: {}]   ;;  %s335_s1 = inlined_call_operand.hbm [shape: f32[2,8,128], index: 1, kind: input, shape index: {}]   ;;  %s336_s2 = inlined_call_operand.hbm [shape: f32[1,2,128], index: 2, kind: output, shape index: {0}]   ;;  %s337_s3 = inlined_call_operand.hbm [shape: f32[1,2,128], index: 3, kind: output, shape index: {1}]  }
   0x1   :  { %10 = vsyncpa [#allocation6], 0 }
   0x2   :  { %11 = vsyncpa [#allocation4], 0 }
   0x3   :  { %12 = vsyncpa [#allocation9], 0  ;;  %s259_s12 = smov [#allocation2]   ;;  %s163_s16 = scalar_lea.hbm %s334_s0, 256 }
   0x4   :  { %s21_s13 = sshll.u32 %s259_s12, 4  ;;  %p164_p0 = scmp.ne.s32.totalorder %s334_s0, %s163_s16  ;;  %s22_s13 = int_to_ptr.vmem [resolvable:$true] %s21_s13 }
   0x5   :  { %p167_p1 = scmp.lt.u32.totalorder %s163_s16, %s334_s0 }
   0x7   :  { %p169_p2 = pnand %p167_p1, %p164_p0 }
   0x9   :  { %172 = shalt.err (!%p169_p2)
}
   0xa   :  { %s173_s21 = scalar_lea.vmem %s22_s13, 256  ;;  %p178_p4 = scmp.lt.s32.totalorder %s22_s13, %s22_s13 }
   0xb   :  { %p174_p3 = scmp.ne.s32.totalorder %s22_s13, %s173_s21  ;;  %p179_p5 = scmp.lt.s32.totalorder %s173_s21, %s173_s21 }
   0xd   :  { %p180_p6 = por %p179_p5, %p178_p4 }
   0xf   :  { %p181_p7 = pnand %p180_p6, %p174_p3 }
  0x11   :  { %184 = shalt.err (!%p181_p7)
}
  0x12   :  { %s260_s22 = smov 128   ;;  %s261_s23 = smov 8  }
  0x13   :  { %27 = dma.hbm_to_vmem [thread:$0]  %s334_s0, 256, %s22_s13, [#allocation3], %s260_s22, %s260_s22, %s261_s23  }
  0x14   :  { %s262_s26 = smov [#allocation5]   ;;  %s185_s30 = scalar_lea.hbm %s335_s1, 256 }
  0x15   :  { %s36_s27 = sshll.u32 %s262_s26, 4  ;;  %p186_p8 = scmp.ne.s32.totalorder %s335_s1, %s185_s30  ;;  %s37_s27 = int_to_ptr.vmem [resolvable:$true] %s36_s27 }
  0x16   :  { %p189_p9 = scmp.lt.u32.totalorder %s185_s30, %s335_s1 }
  0x18   :  { %p191_p10 = pnand %p189_p9, %p186_p8 }
  0x1a   :  { %194 = shalt.err (!%p191_p10)
}
  0x1b   :  { %s195_s8 = scalar_lea.vmem %s37_s27, 256  ;;  %p200_p12 = scmp.lt.s32.totalorder %s37_s27, %s37_s27 }
  0x1c   :  { %p196_p11 = scmp.ne.s32.totalorder %s37_s27, %s195_s8  ;;  %p201_p13 = scmp.lt.s32.totalorder %s195_s8, %s195_s8 }
  0x1e   :  { %p202_p0 = por %p201_p13, %p200_p12 }
  0x20   :  { %p203_p1 = pnand %p202_p0, %p196_p11 }
  0x22   :  { %206 = shalt.err (!%p203_p1)
}
  0x23   :  { %42 = dma.hbm_to_vmem [thread:$0]  %s335_s1, 256, %s37_s27, [#allocation6], %s260_s22, %s260_s22, %s261_s23  }
  0x24   :  { %251 = dma.done.wait [#allocation3], 256  }
  0x25   :  { %252 = vsyncadd [#allocation3], 4294967040 }
  0x26   :  { %253 = dma.done.wait [#allocation6], 256  }
  0x27   :  { %254 = vsyncadd [#allocation6], 4294967040  ;;  %v263_v0 = vmov 0.0   ;;  %v57_v1 = vld [vmem:[#allocation2] sm:$0xff]  ;;  %v58_v2 = vld [vmem:[#allocation2 + $0x8] sm:$0xff]  ;;  %vm90_vm0 = vcmask 1041409  }
  0x28   :  { %55 = vst [vmem:[#allocation7] sm:$0x3] %v263_v0  ;;  %56 = vst [vmem:[#allocation8] sm:$0x3] %v263_v0  ;;  %v146_v3 = vmul.f32 -1.442695, %v57_v1 }
  0x29   :  { %v147_v4 = vmul.f32 -1.442695, %v58_v2  ;;  %v71_v9 = vld [vmem:[#allocation5] sm:$0xff]  ;;  %v72_v10 = vld [vmem:[#allocation5 + $0x8] sm:$0xff]  ;;  %s264_s1 = smov [#allocation7]   ;;  %s265_s11 = smov [#allocation8]  }
  0x2a   :  { %155 = vpow2.f32 %v146_v3  ;;  %s122_s10 = sshll.u32 %s264_s1, 4  ;;  %s132_s12 = sshll.u32 %s265_s11, 4  ;;  %s123_s10 = int_to_ptr.vmem [resolvable:$true] %s122_s10  ;;  %s133_s12 = int_to_ptr.vmem [resolvable:$true] %s132_s12 }
  0x2b   :  { %157 = vpow2.f32 %v147_v4  ;;  %s207_s13 = scalar_lea.vmem %s123_s10, 32  ;;  %p212_p3 = scmp.lt.s32.totalorder %s123_s10, %s123_s10 }
  0x2c   :  { %p208_p2 = scmp.ne.s32.totalorder %s123_s10, %s207_s13  ;;  %p213_p4 = scmp.lt.s32.totalorder %s207_s13, %s207_s13 }
  0x2e   :  { %p214_p5 = por %p213_p4, %p212_p3 }
  0x2f   :  { %v73_v39 = vld [vmem:[#allocation7] sm:$0x3]  ;;  %v95_v41 = vld [vmem:[#allocation8] sm:$0x3] }
  0x30   :  { %p215_p6 = pnand %p214_p5, %p208_p2 }
  0x34   :  { %v156_v5 = vpop.eup %155 }
  0x35   :  { %v158_v6 = vpop.eup %157  ;;  %v65_v7 = vadd.f32 1.0, %v156_v5 }
  0x36   :  { %v66_v8 = vadd.f32 1.0, %v158_v6 }
  0x37   :  { %159 = vrcp.f32 %v65_v7 }
  0x38   :  { %161 = vrcp.f32 %v66_v8 }
  0x41   :  { %v160_v11 = vpop.eup %159 }
  0x42   :  { %v162_v12 = vpop.eup %161  ;;  %v74_v13 = vmul.f32 %v160_v11, %v71_v9  ;;  %v96_v14 = vadd.f32 %v160_v11, %v71_v9 }
  0x43   :  { %v75_v15 = vmul.f32 %v162_v12, %v72_v10  ;;  %v97_v16 = vadd.f32 %v162_v12, %v72_v10 }
  0x44   :  { %v76_v17 = vrot.slane %v74_v13, 4  ;;  %v98_v18 = vrot.slane %v96_v14, 4 }
  0x45   :  { %v82_v19 = vrot.slane %v75_v15, 4  ;;  %v104_v20 = vrot.slane %v97_v16, 4 }
  0x46   :  { %v77_v21 = vadd.f32 %v76_v17, %v74_v13  ;;  %v99_v22 = vadd.f32 %v98_v18, %v96_v14 }
  0x47   :  { %v83_v23 = vadd.f32 %v82_v19, %v75_v15  ;;  %v105_v24 = vadd.f32 %v104_v20, %v97_v16 }
  0x48   :  { %v78_v25 = vrot.slane %v77_v21, 2  ;;  %v100_v26 = vrot.slane %v99_v22, 2 }
  0x49   :  { %v84_v27 = vrot.slane %v83_v23, 2  ;;  %v106_v28 = vrot.slane %v105_v24, 2 }
  0x4a   :  { %v79_v29 = vadd.f32 %v78_v25, %v77_v21  ;;  %v101_v30 = vadd.f32 %v100_v26, %v99_v22 }
  0x4b   :  { %v85_v31 = vadd.f32 %v84_v27, %v83_v23  ;;  %v107_v32 = vadd.f32 %v106_v28, %v105_v24 }
  0x4c   :  { %v80_v33 = vrot.slane %v79_v29, 1  ;;  %v102_v34 = vrot.slane %v101_v30, 1 }
  0x4d   :  { %v86_v35 = vrot.slane %v85_v31, 1  ;;  %v108_v36 = vrot.slane %v107_v32, 1 }
  0x4e   :  { %v81_v37 = vadd.f32 %v80_v33, %v79_v29  ;;  %v103_v38 = vadd.f32 %v102_v34, %v101_v30 }
  0x4f   :  { %v87_v40 = vadd.f32 %v86_v35, %v85_v31  ;;  %v109_v42 = vadd.f32 %v108_v36, %v107_v32 }
  0x51   :  { %v91_v43 = vsel %vm90_vm0, %v87_v40, %v81_v37  ;;  %v112_v44 = vsel %vm90_vm0, %v109_v42, %v103_v38 }
  0x52   :  { %v93_v45 = vadd.f32 %v91_v43, %v73_v39  ;;  %v114_v46 = vadd.f32 %v112_v44, %v95_v41 }
  0x54   :  { %94 = vst [vmem:[#allocation7] sm:$0x3] %v93_v45  ;;  %115 = vst [vmem:[#allocation8] sm:$0x3] %v114_v46 }
  0x55   :  { %218 = shalt.err (!%p215_p6)
}
  0x56   :  { %s219_s16 = scalar_lea.hbm %s336_s2, 32 }
  0x57   :  { %p220_p7 = scmp.ne.s32.totalorder %s336_s2, %s219_s16  ;;  %p223_p8 = scmp.lt.u32.totalorder %s219_s16, %s336_s2 }
  0x59   :  { %p225_p9 = pnand %p223_p8, %p220_p7 }
  0x5b   :  { %228 = shalt.err (!%p225_p9)
}
  0x5c   :  { %125 = dma.vmem_to_hbm [thread:$0]  %s123_s10, 32, %s336_s2, [#allocation4]  }
  0x5d   :  { %s229_s23 = scalar_lea.vmem %s133_s12, 32  ;;  %p234_p11 = scmp.lt.s32.totalorder %s133_s12, %s133_s12 }
  0x5e   :  { %p230_p10 = scmp.ne.s32.totalorder %s133_s12, %s229_s23  ;;  %p235_p12 = scmp.lt.s32.totalorder %s229_s23, %s229_s23 }
  0x60   :  { %p236_p13 = por %p235_p12, %p234_p11 }
  0x62   :  { %p237_p0 = pnand %p236_p13, %p230_p10 }
  0x64   :  { %240 = shalt.err (!%p237_p0)
}
  0x65   :  { %s241_s26 = scalar_lea.hbm %s337_s3, 32 }
  0x66   :  { %p242_p1 = scmp.ne.s32.totalorder %s337_s3, %s241_s26  ;;  %p245_p2 = scmp.lt.u32.totalorder %s241_s26, %s337_s3 }
  0x68   :  { %p247_p3 = pnand %p245_p2, %p242_p1 }
  0x6a   :  { %250 = shalt.err (!%p247_p3)
}
  0x6b   :  { %135 = dma.vmem_to_hbm [thread:$0]  %s133_s12, 32, %s337_s3, [#allocation9]  }
  0x6c   :  { %255 = dma.done.wait [#allocation4], 32  }
  0x6d   :  { %256 = vsyncadd [#allocation4], 4294967264 }
  0x6e   :  { %257 = dma.done.wait [#allocation9], 32  }
  0x6f   :  { %258 = vsyncadd [#allocation9], 4294967264 }
  0x70   :  { %142 = vsyncpa [#allocation3], 1 }
  0x71   :  { %143 = vsyncpa [#allocation6], 1 }
  0x72   :  { %144 = vsyncpa [#allocation4], 1 }
  0x73   :  { %145 = vsyncpa [#allocation9], 1 }

</bundles_post_ra>
